<compile_context>
chip_gen: v7x
topology: tpu7x:2x2x1
jax: 0.10.0
libtpu: 0.0.40
codegen_flags: <defaults>
</compile_context>

<pallas_src>
import numpy as np
import jax
import jax.numpy as jnp
from jax.experimental import pallas as pl
from jax.experimental.pallas import tpu as pltpu

WAFER = 8
PIX = WAFER * WAFER            # 64 pixels per wafer
PIX_PAD = 128                  # lane-padded pixel dim
CCH = 8                        # conv output channels
HID = CCH * 4 * 4              # 128 features after 2x2 max-pool + flatten
E = 8                          # latent size
E_PAD = 128                    # lane-padded latent
CONV_FEAT = 4 * HID            # 512 conv features, pool-slot-major

CONV_MASK = np.array([[1.0, 1.0, 0.0],
                      [1.0, 1.0, 1.0],
                      [0.0, 1.0, 1.0]], dtype=np.float32)


# ---------------------------------------------------------------------------
# Static (weight-independent) index tensors turning conv / conv-transpose into
# exact dense matrices.
# ---------------------------------------------------------------------------
def _conv_patch_tensor():
    # P[in_pix, out_pos, ktap] for Conv2d(k=3, s=1, p=1): 8x8 -> 8x8.
    P = np.zeros((PIX, PIX, 9), dtype=np.float32)
    for oy in range(WAFER):
        for ox in range(WAFER):
            for ky in range(3):
                for kx in range(3):
                    iy, ix = oy - 1 + ky, ox - 1 + kx
                    if 0 <= iy < WAFER and 0 <= ix < WAFER:
                        P[iy * WAFER + ix, oy * WAFER + ox, ky * 3 + kx] = 1.0
    return P


def _pool_slot_permutation():
    # Conv feature (c, y, x) -> column slot*128 + c*16 + py*4 + px,
    # slot = (y%2)*2 + (x%2), (py, px) = (y//2, x//2).  Pooling then becomes an
    # elementwise max over the 4 lane-aligned 128-wide slots, and the result is
    # already in PyTorch flatten(1) order (c, py, px).
    perm = np.zeros(CONV_FEAT, dtype=np.int64)
    for dy in range(2):
        for dx in range(2):
            slot = dy * 2 + dx
            for c in range(CCH):
                for py in range(4):
                    for px in range(4):
                        col = slot * HID + c * 16 + py * 4 + px
                        perm[col] = c * PIX + (2 * py + dy) * WAFER + (2 * px + dx)
    return perm


def _deconv_scatter_tensor():
    # S[in_pos(c,py,px), out_pix, ktap] for ConvTranspose2d(k=3, s=2, p=1, out_p=1):
    # 4x4 -> 8x8.
    S = np.zeros((HID, PIX, 9), dtype=np.float32)
    for c in range(CCH):
        for py in range(4):
            for px in range(4):
                pos = c * 16 + py * 4 + px
                for ky in range(3):
                    for kx in range(3):
                        oy, ox = 2 * py - 1 + ky, 2 * px - 1 + kx
                        if 0 <= oy < WAFER and 0 <= ox < WAFER:
                            S[pos, oy * WAFER + ox, ky * 3 + kx] = 1.0
    return S


_P_CONV = _conv_patch_tensor()
_POOL_PERM = _pool_slot_permutation()
_S_DECONV = _deconv_scatter_tensor()


# ---------------------------------------------------------------------------
# Deterministic parameter construction.
# ---------------------------------------------------------------------------
def init_params(seed=0):
    """Returns (raw torch-layout params for the reference, padded bf16 kernel params)."""
    key = jax.random.PRNGKey(seed)
    ks = jax.random.split(key, 7)
    raw = {
        "conv_w": 0.1 * jax.random.normal(ks[0], (CCH, 1, 3, 3), jnp.float32),
        "enc_w": 0.1 * jax.random.normal(ks[1], (E, HID), jnp.float32),
        "enc_b": 0.1 * jax.random.normal(ks[2], (E,), jnp.float32),
        "dec_w": 0.1 * jax.random.normal(ks[3], (HID, E), jnp.float32),
        "dec_b": 0.1 * jax.random.normal(ks[4], (HID,), jnp.float32),
        "tcv_w": 0.1 * jax.random.normal(ks[5], (CCH, 1, 3, 3), jnp.float32),
        "tcv_b": 0.1 * jax.random.normal(ks[6], (1,), jnp.float32),
    }

    # Masked conv as dense (PIX_PAD, 512), columns in pool-slot order. No bias.
    mw = (raw["conv_w"] * CONV_MASK[None, None]).reshape(CCH, 9)
    w1 = jnp.einsum("iok,ck->ico", jnp.asarray(_P_CONV), mw).reshape(PIX, CONV_FEAT)
    w1 = w1[:, _POOL_PERM]
    w1p = jnp.zeros((PIX_PAD, CONV_FEAT), jnp.float32).at[:PIX].set(w1)

    # Linear(128, 8): latent zero-padded 8 -> 128 lanes.
    w2p = jnp.zeros((HID, E_PAD), jnp.float32).at[:, :E].set(raw["enc_w"].T)
    b2p = jnp.zeros((1, E_PAD), jnp.float32).at[0, :E].set(raw["enc_b"])

    # Linear(8, 128): padded latent rows are zero -> exact.
    w3p = jnp.zeros((E_PAD, HID), jnp.float32).at[:E].set(raw["dec_w"].T)
    b3p = raw["dec_b"].reshape(1, HID)

    # ConvTranspose2d(8->1) as dense (HID, PIX_PAD); output lanes 64..127 are zero.
    wk = jnp.repeat(raw["tcv_w"].reshape(CCH, 9), 16, axis=0)          # (128, 9)
    w4 = jnp.einsum("pok,pk->po", jnp.asarray(_S_DECONV), wk)          # (128, 64)
    w4p = jnp.zeros((HID, PIX_PAD), jnp.float32).at[:, :PIX].set(w4)
    b4p = jnp.zeros((1, PIX_PAD), jnp.float32).at[0, :PIX].set(raw["tcv_b"][0])

    kernel_params = {
        "w1": w1p.astype(jnp.bfloat16),
        "w2": w2p.astype(jnp.bfloat16), "b2": b2p,
        "w3": w3p.astype(jnp.bfloat16), "b3": b3p,
        "w4": w4p.astype(jnp.bfloat16), "b4": b4p,
    }
    return raw, kernel_params


# ---------------------------------------------------------------------------
# Pallas kernel: full encode -> decode for one batch-row tile.
# ---------------------------------------------------------------------------
def _wafer_ae_kernel(x_ref, w1_ref, w2_ref, b2_ref, w3_ref, b3_ref,
                     w4_ref, b4_ref, o_ref):
    x = x_ref[...]                                                     # (M, 128) bf16
    # Masked Conv2d (dense, no bias) + ReLU. Columns are pool-slot-major.
    h = jnp.dot(x, w1_ref[...], preferred_element_type=jnp.float32)   # (M, 512) f32
    h = jnp.maximum(h, 0.0)
    # MaxPool2d(2): elementwise max over the 4 lane-aligned 128-wide slots.
    pooled = jnp.maximum(jnp.maximum(h[:, 0 * HID:1 * HID], h[:, 1 * HID:2 * HID]),
                         jnp.maximum(h[:, 2 * HID:3 * HID], h[:, 3 * HID:4 * HID]))
    # Linear(128, 8) + ReLU (latent padded to 128 lanes, pads stay exactly 0).
    z = jnp.dot(pooled.astype(jnp.bfloat16), w2_ref[...],
                preferred_element_type=jnp.float32) + b2_ref[...]
    z = jnp.maximum(z, 0.0)
    # Linear(8, 128) + ReLU.
    d = jnp.dot(z.astype(jnp.bfloat16), w3_ref[...],
                preferred_element_type=jnp.float32) + b3_ref[...]
    d = jnp.maximum(d, 0.0)
    # ConvTranspose2d (dense) + bias + ReLU. Lane-dense (128-wide) store.
    y = jnp.dot(d.astype(jnp.bfloat16), w4_ref[...],
                preferred_element_type=jnp.float32) + b4_ref[...]
    o_ref[...] = jnp.maximum(y, 0.0)


def autoencoder_forward(x, kernel_params, m_tile_max=256):
    """x: (B, 1, 8, 8). Returns the reconstruction (B, 1, 8, 8) float32."""
    B = x.shape[0]
    m_tile = min(m_tile_max, max(8, -(-B // 8) * 8))     # sublane-aligned row tile
    B_pad = -(-B // m_tile) * m_tile
    xf = x.reshape(B, PIX).astype(jnp.bfloat16)
    xp = jnp.zeros((B_pad, PIX_PAD), jnp.bfloat16).at[:B, :PIX].set(xf)

    p = kernel_params
    out = pl.pallas_call(
        _wafer_ae_kernel,
        out_shape=jax.ShapeDtypeStruct((B_pad, PIX_PAD), jnp.float32),
        grid=(B_pad // m_tile,),
        in_specs=[
            pl.BlockSpec((m_tile, PIX_PAD), lambda i: (i, 0)),        # x tile (streams)
            pl.BlockSpec((PIX_PAD, CONV_FEAT), lambda i: (0, 0)),     # weights: constant
            pl.BlockSpec((HID, E_PAD), lambda i: (0, 0)),             #  block index ->
            pl.BlockSpec((1, E_PAD), lambda i: (0, 0)),               #  VMEM-resident,
            pl.BlockSpec((E_PAD, HID), lambda i: (0, 0)),             #  no re-DMA
            pl.BlockSpec((1, HID), lambda i: (0, 0)),
            pl.BlockSpec((HID, PIX_PAD), lambda i: (0, 0)),
            pl.BlockSpec((1, PIX_PAD), lambda i: (0, 0)),
        ],
        out_specs=pl.BlockSpec((m_tile, PIX_PAD), lambda i: (i, 0)),
        compiler_params=pltpu.CompilerParams(dimension_semantics=("parallel",)),
    )(xp, p["w1"], p["w2"], p["b2"], p["w3"], p["b3"], p["w4"], p["b4"])

    return out[:B, :PIX].reshape(B, 1, WAFER, WAFER)


# ---------------------------------------------------------------------------
# Plain-JAX f32 reference using real conv / pool / conv-transpose ops.
# ---------------------------------------------------------------------------
def _reference_forward(x, raw):
    B = x.shape[0]
    w = raw["conv_w"] * CONV_MASK[None, None]
    h = jax.lax.conv_general_dilated(
        x.astype(jnp.float32), w, window_strides=(1, 1), padding=((1, 1), (1, 1)),
        dimension_numbers=("NCHW", "OIHW", "NCHW"))
    h = jnp.maximum(h, 0.0)
    h = h.reshape(B, CCH, 4, 2, 4, 2).max(axis=(3, 5))                 # MaxPool2d(2)
    h = h.reshape(B, HID)                                              # flatten(1)
    z = jnp.maximum(h @ raw["enc_w"].T + raw["enc_b"], 0.0)
    d = jnp.maximum(z @ raw["dec_w"].T + raw["dec_b"], 0.0)
    d = d.reshape(B, CCH, 4, 4)
    # ConvTranspose2d(8,1,3,s=2,p=1,out_p=1) == lhs-dilated conv, flipped kernel.
    wt = jnp.flip(raw["tcv_w"], axis=(2, 3)).transpose(1, 0, 2, 3)     # (1, 8, 3, 3)
    y = jax.lax.conv_general_dilated(
        d, wt, window_strides=(1, 1), padding=((1, 2), (1, 2)),
        lhs_dilation=(2, 2), dimension_numbers=("NCHW", "OIHW", "NCHW"))
    y = y + raw["tcv_b"][0]
    return jnp.maximum(y, 0.0)


if __name__ == "__main__":
    raw, kparams = init_params(seed=0)

    # Small shape consistent with the module: batch=2 wafers of (1, 8, 8).
    x_small = jax.random.uniform(jax.random.PRNGKey(0), (2, 1, WAFER, WAFER),
                                 jnp.float32)
    out_small = jax.block_until_ready(autoencoder_forward(x_small, kparams))
    assert out_small.shape == (2, 1, WAFER, WAFER)
    ref_small = _reference_forward(x_small, raw)
    np.testing.assert_allclose(np.asarray(out_small), np.asarray(ref_small),
                               rtol=2e-2, atol=2e-2)

    # Larger batch to exercise the M=256 row tiling (multi-step parallel grid).
    x_big = jax.random.uniform(jax.random.PRNGKey(1), (512, 1, WAFER, WAFER),
                               jnp.float32)
    out_big = jax.block_until_ready(autoencoder_forward(x_big, kparams))
    ref_big = _reference_forward(x_big, raw)
    np.testing.assert_allclose(np.asarray(out_big), np.asarray(ref_big),
                               rtol=2e-2, atol=2e-2)

    print("KERNEL_OK")
</pallas_src>

<mosaic_0001>
module attributes {stable_mosaic.version = 11 : i64} {
  func.func @_wafer_ae_kernel(%arg0: i32, %arg1: memref<8x128xbf16, #tpu.memory_space<vmem>>, %arg2: memref<128x512xbf16, #tpu.memory_space<vmem>>, %arg3: memref<128x128xbf16, #tpu.memory_space<vmem>>, %arg4: memref<1x128xf32, #tpu.memory_space<vmem>>, %arg5: memref<128x128xbf16, #tpu.memory_space<vmem>>, %arg6: memref<1x128xf32, #tpu.memory_space<vmem>>, %arg7: memref<128x128xbf16, #tpu.memory_space<vmem>>, %arg8: memref<1x128xf32, #tpu.memory_space<vmem>>, %arg9: memref<8x128xf32, #tpu.memory_space<vmem>>) attributes {dimension_semantics = [#tpu.dimension_semantics<parallel>], iteration_bounds = array<i64: 1>, scalar_prefetch = 0 : i64, scratch_operands = 0 : i64, tpu.core_type = #tpu.core_type<tc>, window_params = [{transform_indices = @transform_0, window_bounds = array<i64: 8, 128>}, {pipeline_mode = #tpu.pipeline_mode<synchronous>, transform_indices = @transform_1, window_bounds = array<i64: 128, 512>}, {pipeline_mode = #tpu.pipeline_mode<synchronous>, transform_indices = @transform_2, window_bounds = array<i64: 128, 128>}, {pipeline_mode = #tpu.pipeline_mode<synchronous>, transform_indices = @transform_3, window_bounds = array<i64: 1, 128>}, {pipeline_mode = #tpu.pipeline_mode<synchronous>, transform_indices = @transform_4, window_bounds = array<i64: 128, 128>}, {pipeline_mode = #tpu.pipeline_mode<synchronous>, transform_indices = @transform_5, window_bounds = array<i64: 1, 128>}, {pipeline_mode = #tpu.pipeline_mode<synchronous>, transform_indices = @transform_6, window_bounds = array<i64: 128, 128>}, {pipeline_mode = #tpu.pipeline_mode<synchronous>, transform_indices = @transform_7, window_bounds = array<i64: 1, 128>}, {transform_indices = @transform_8, window_bounds = array<i64: 8, 128>}]} {
    %c0 = arith.constant 0 : index
    %c0_0 = arith.constant 0 : index
    %0 = vector.load %arg1[%c0, %c0_0] : memref<8x128xbf16, #tpu.memory_space<vmem>>, vector<8x128xbf16>
    %c0_1 = arith.constant 0 : index
    %c0_2 = arith.constant 0 : index
    %1 = vector.load %arg2[%c0_1, %c0_2] : memref<128x512xbf16, #tpu.memory_space<vmem>>, vector<128x512xbf16>
    %cst = arith.constant dense<0.000000e+00> : vector<8x512xf32>
    %2 = tpu.matmul %0, %1, %cst {dimension_numbers = #tpu.dot_dimension_numbers<[1], [0], [0], [1], [0, 0, 1, 1], [], []>} : vector<8x128xbf16>, vector<128x512xbf16>, vector<8x512xf32> -> vector<8x512xf32>
    %cst_3 = arith.constant 0.000000e+00 : f32
    %3 = vector.broadcast %cst_3 : f32 to vector<8x512xf32>
    %4 = arith.maximumf %2, %3 : vector<8x512xf32>
    %5 = vector.extract_strided_slice %4 {offsets = [0, 0], sizes = [8, 128], strides = [1, 1]} : vector<8x512xf32> to vector<8x128xf32>
    %6 = vector.extract_strided_slice %4 {offsets = [0, 128], sizes = [8, 128], strides = [1, 1]} : vector<8x512xf32> to vector<8x128xf32>
    %7 = arith.maximumf %5, %6 : vector<8x128xf32>
    %8 = vector.extract_strided_slice %4 {offsets = [0, 256], sizes = [8, 128], strides = [1, 1]} : vector<8x512xf32> to vector<8x128xf32>
    %9 = vector.extract_strided_slice %4 {offsets = [0, 384], sizes = [8, 128], strides = [1, 1]} : vector<8x512xf32> to vector<8x128xf32>
    %10 = arith.maximumf %8, %9 : vector<8x128xf32>
    %11 = arith.maximumf %7, %10 : vector<8x128xf32>
    %12 = arith.truncf %11 : vector<8x128xf32> to vector<8x128xbf16>
    %c0_4 = arith.constant 0 : index
    %c0_5 = arith.constant 0 : index
    %13 = vector.load %arg3[%c0_4, %c0_5] : memref<128x128xbf16, #tpu.memory_space<vmem>>, vector<128x128xbf16>
    %cst_6 = arith.constant dense<0.000000e+00> : vector<8x128xf32>
    %14 = tpu.matmul %12, %13, %cst_6 {dimension_numbers = #tpu.dot_dimension_numbers<[1], [0], [0], [1], [0, 0, 1, 1], [], []>} : vector<8x128xbf16>, vector<128x128xbf16>, vector<8x128xf32> -> vector<8x128xf32>
    %c0_7 = arith.constant 0 : index
    %c0_8 = arith.constant 0 : index
    %15 = vector.load %arg4[%c0_7, %c0_8] : memref<1x128xf32, #tpu.memory_space<vmem>>, vector<1x128xf32>
    %16 = vector.broadcast %15 : vector<1x128xf32> to vector<8x128xf32>
    %17 = arith.addf %14, %16 : vector<8x128xf32>
    %cst_9 = arith.constant 0.000000e+00 : f32
    %18 = vector.broadcast %cst_9 : f32 to vector<8x128xf32>
    %19 = arith.maximumf %17, %18 : vector<8x128xf32>
    %20 = arith.truncf %19 : vector<8x128xf32> to vector<8x128xbf16>
    %c0_10 = arith.constant 0 : index
    %c0_11 = arith.constant 0 : index
    %21 = vector.load %arg5[%c0_10, %c0_11] : memref<128x128xbf16, #tpu.memory_space<vmem>>, vector<128x128xbf16>
    %cst_12 = arith.constant dense<0.000000e+00> : vector<8x128xf32>
    %22 = tpu.matmul %20, %21, %cst_12 {dimension_numbers = #tpu.dot_dimension_numbers<[1], [0], [0], [1], [0, 0, 1, 1], [], []>} : vector<8x128xbf16>, vector<128x128xbf16>, vector<8x128xf32> -> vector<8x128xf32>
    %c0_13 = arith.constant 0 : index
    %c0_14 = arith.constant 0 : index
    %23 = vector.load %arg6[%c0_13, %c0_14] : memref<1x128xf32, #tpu.memory_space<vmem>>, vector<1x128xf32>
    %24 = vector.broadcast %23 : vector<1x128xf32> to vector<8x128xf32>
    %25 = arith.addf %22, %24 : vector<8x128xf32>
    %cst_15 = arith.constant 0.000000e+00 : f32
    %26 = vector.broadcast %cst_15 : f32 to vector<8x128xf32>
    %27 = arith.maximumf %25, %26 : vector<8x128xf32>
    %28 = arith.truncf %27 : vector<8x128xf32> to vector<8x128xbf16>
    %c0_16 = arith.constant 0 : index
    %c0_17 = arith.constant 0 : index
    %29 = vector.load %arg7[%c0_16, %c0_17] : memref<128x128xbf16, #tpu.memory_space<vmem>>, vector<128x128xbf16>
    %cst_18 = arith.constant dense<0.000000e+00> : vector<8x128xf32>
    %30 = tpu.matmul %28, %29, %cst_18 {dimension_numbers = #tpu.dot_dimension_numbers<[1], [0], [0], [1], [0, 0, 1, 1], [], []>} : vector<8x128xbf16>, vector<128x128xbf16>, vector<8x128xf32> -> vector<8x128xf32>
    %c0_19 = arith.constant 0 : index
    %c0_20 = arith.constant 0 : index
    %31 = vector.load %arg8[%c0_19, %c0_20] : memref<1x128xf32, #tpu.memory_space<vmem>>, vector<1x128xf32>
    %32 = vector.broadcast %31 : vector<1x128xf32> to vector<8x128xf32>
    %33 = arith.addf %30, %32 : vector<8x128xf32>
    %cst_21 = arith.constant 0.000000e+00 : f32
    %34 = vector.broadcast %cst_21 : f32 to vector<8x128xf32>
    %35 = arith.maximumf %33, %34 : vector<8x128xf32>
    %c0_22 = arith.constant 0 : index
    %c0_23 = arith.constant 0 : index
    %36 = vector.load %arg9[%c0_22, %c0_23] : memref<8x128xf32, #tpu.memory_space<vmem>>, vector<8x128xf32>
    tpu.vector_store %arg9[%c0_22, %c0_23], %35 {strides = array<i32>} : memref<8x128xf32, #tpu.memory_space<vmem>>, vector<8x128xf32>,
    return
  }
  func.func @transform_0(%arg0: i32) -> (i32, i32) {
    %c0_i32 = arith.constant 0 : i32
    %c0_i32_0 = arith.constant 0 : i32
    return %arg0, %c0_i32 : i32, i32
  }
  func.func @transform_1(%arg0: i32) -> (i32, i32) {
    %c0_i32 = arith.constant 0 : i32
    %c0_i32_0 = arith.constant 0 : i32
    %c0_i32_1 = arith.constant 0 : i32
    return %c0_i32, %c0_i32_0 : i32, i32
  }
  func.func @transform_2(%arg0: i32) -> (i32, i32) {
    %c0_i32 = arith.constant 0 : i32
    %c0_i32_0 = arith.constant 0 : i32
    %c0_i32_1 = arith.constant 0 : i32
    return %c0_i32, %c0_i32_0 : i32, i32
  }
  func.func @transform_3(%arg0: i32) -> (i32, i32) {
    %c0_i32 = arith.constant 0 : i32
    %c0_i32_0 = arith.constant 0 : i32
    %c0_i32_1 = arith.constant 0 : i32
    return %c0_i32, %c0_i32_0 : i32, i32
  }
  func.func @transform_4(%arg0: i32) -> (i32, i32) {
    %c0_i32 = arith.constant 0 : i32
    %c0_i32_0 = arith.constant 0 : i32
    %c0_i32_1 = arith.constant 0 : i32
    return %c0_i32, %c0_i32_0 : i32, i32
  }
  func.func @transform_5(%arg0: i32) -> (i32, i32) {
    %c0_i32 = arith.constant 0 : i32
    %c0_i32_0 = arith.constant 0 : i32
    %c0_i32_1 = arith.constant 0 : i32
    return %c0_i32, %c0_i32_0 : i32, i32
  }
  func.func @transform_6(%arg0: i32) -> (i32, i32) {
    %c0_i32 = arith.constant 0 : i32
    %c0_i32_0 = arith.constant 0 : i32
    %c0_i32_1 = arith.constant 0 : i32
    return %c0_i32, %c0_i32_0 : i32, i32
  }
  func.func @transform_7(%arg0: i32) -> (i32, i32) {
    %c0_i32 = arith.constant 0 : i32
    %c0_i32_0 = arith.constant 0 : i32
    %c0_i32_1 = arith.constant 0 : i32
    return %c0_i32, %c0_i32_0 : i32, i32
  }
  func.func @transform_8(%arg0: i32) -> (i32, i32) {
    %c0_i32 = arith.constant 0 : i32
    %c0_i32_0 = arith.constant 0 : i32
    return %arg0, %c0_i32 : i32, i32
  }
}

</mosaic_0001>

<bundles_post_ra>
// kernel: tpu_custom_call.1
= control target key start
LH: loop header
LB: loop body
LE: loop exit
PB: predicated region body
PF: predicated region fallthrough
CT: control target
= control target key end

     0   :  { %13 = vsyncpa [#allocation3], 0  ;;  %s1285_s0 = inlined_call_operand.hbm [shape: bf16[8,128], index: 0, kind: input, shape index: {}]   ;;  %s1286_s1 = inlined_call_operand.hbm [shape: bf16[128,512], index: 1, kind: input, shape index: {}]   ;;  %s1287_s2 = inlined_call_operand.hbm [shape: bf16[128,128], index: 2, kind: input, shape index: {}]   ;;  %s1288_s3 = inlined_call_operand.vmem [shape: f32[1,128], index: 3, kind: input, shape index: {}]   ;;  %s1289_s4 = inlined_call_operand.hbm [shape: bf16[128,128], index: 4, kind: input, shape index: {}]   ;;  %s1290_s5 = inlined_call_operand.vmem [shape: f32[1,128], index: 5, kind: input, shape index: {}]   ;;  %s1291_s6 = inlined_call_operand.hbm [shape: bf16[128,128], index: 6, kind: input, shape index: {}]   ;;  %s1292_s7 = inlined_call_operand.vmem [shape: f32[1,128], index: 7, kind: input, shape index: {}]   ;;  %s1293_s8 = inlined_call_operand.hbm [shape: f32[8,128], index: 8, kind: output, shape index: {}]  }
   0x1   :  { %14 = vsyncpa [#allocation6], 0 }
   0x2   :  { %15 = vsyncpa [#allocation9], 0 }
   0x3   :  { %16 = vsyncpa [#allocation4], 0  ;;  %s1107_s27 = smov [#allocation5]   ;;  %s967_s9 = scalar_lea.hbm %s1286_s1, 4096 }
   0x4   :  { %s32_s28 = sshll.u32 %s1107_s27, 4  ;;  %p968_p0 = scmp.ne.s32.totalorder %s1286_s1, %s967_s9  ;;  %s33_s28 = int_to_ptr.vmem [resolvable:$true] %s32_s28 }
   0x5   :  { %p971_p1 = scmp.lt.u32.totalorder %s967_s9, %s1286_s1 }
   0x7   :  { %p973_p2 = pnand %p971_p1, %p968_p0 }
   0x9   :  { %976 = shalt.err (!%p973_p2)
}
   0xa   :  { %s977_s14 = scalar_lea.vmem %s33_s28, 4096  ;;  %p982_p4 = scmp.lt.s32.totalorder %s33_s28, %s33_s28 }
   0xb   :  { %p978_p3 = scmp.ne.s32.totalorder %s33_s28, %s977_s14  ;;  %p983_p5 = scmp.lt.s32.totalorder %s977_s14, %s977_s14 }
   0xd   :  { %p984_p6 = por %p983_p5, %p982_p4 }
   0xf   :  { %p985_p7 = pnand %p984_p6, %p978_p3 }
  0x11   :  { %988 = shalt.err (!%p985_p7)
}
  0x12   :  { %s1108_s15 = smov 256   ;;  %s1109_s16 = smov 16  }
  0x13   :  { %38 = dma.hbm_to_vmem [thread:$0]  %s1286_s1, 4096, %s33_s28, [#allocation6], %s1108_s15, %s1108_s15, %s1109_s16  }
  0x14   :  { %s1110_s19 = smov [#allocation8]   ;;  %s1111_s21 = smov [#allocation2]  }
  0x15   :  { %s58_s20 = sshll.u32 %s1110_s19, 4  ;;  %s23_s22 = sshll.u32 %s1111_s21, 4  ;;  %s59_s20 = int_to_ptr.vmem [resolvable:$true] %s58_s20  ;;  %s24_s22 = int_to_ptr.vmem [resolvable:$true] %s23_s22 }
  0x16   :  { %s989_s25 = scalar_lea.hbm %s1289_s4, 1024 }
  0x17   :  { %p990_p8 = scmp.ne.s32.totalorder %s1289_s4, %s989_s25  ;;  %p993_p9 = scmp.lt.u32.totalorder %s989_s25, %s1289_s4 }
  0x19   :  { %p995_p10 = pnand %p993_p9, %p990_p8 }
  0x1b   :  { %998 = shalt.err (!%p995_p10)
}
  0x1c   :  { %s999_s1 = scalar_lea.vmem %s59_s20, 1024  ;;  %p1004_p12 = scmp.lt.s32.totalorder %s59_s20, %s59_s20 }
  0x1d   :  { %p1000_p11 = scmp.ne.s32.totalorder %s59_s20, %s999_s1  ;;  %p1005_p13 = scmp.lt.s32.totalorder %s999_s1, %s999_s1 }
  0x1f   :  { %p1006_p0 = por %p1005_p13, %p1004_p12 }
  0x21   :  { %p1007_p1 = pnand %p1006_p0, %p1000_p11 }
  0x23   :  { %1010 = shalt.err (!%p1007_p1)
}
  0x24   :  { %s1112_s28 = smov 64   ;;  %s1113_s9 = smov 4  }
  0x25   :  { %64 = dma.hbm_to_vmem [thread:$0]  %s1289_s4, 1024, %s59_s20, [#allocation9], %s1112_s28, %s1112_s28, %s1113_s9  }
  0x26   :  { %s1011_s14 = scalar_lea.hbm %s1285_s0, 64 }
  0x27   :  { %p1012_p2 = scmp.ne.s32.totalorder %s1285_s0, %s1011_s14  ;;  %p1015_p3 = scmp.lt.u32.totalorder %s1011_s14, %s1285_s0 }
  0x29   :  { %p1017_p4 = pnand %p1015_p3, %p1012_p2 }
  0x2b   :  { %1020 = shalt.err (!%p1017_p4)
}
  0x2c   :  { %s1021_s19 = scalar_lea.vmem %s24_s22, 64  ;;  %p1026_p6 = scmp.lt.s32.totalorder %s24_s22, %s24_s22 }
  0x2d   :  { %p1022_p5 = scmp.ne.s32.totalorder %s24_s22, %s1021_s19  ;;  %p1027_p7 = scmp.lt.s32.totalorder %s1021_s19, %s1021_s19 }
  0x2f   :  { %p1028_p8 = por %p1027_p7, %p1026_p6 }
  0x31   :  { %p1029_p9 = pnand %p1028_p8, %p1022_p5 }
  0x33   :  { %1032 = shalt.err (!%p1029_p9)
}
  0x34   :  { %26 = dma.hbm_to_vmem [thread:$0]  %s1285_s0, 64, %s24_s22, [#allocation3]  }
  0x35   :  { %s1114_s21 = smov [#allocation7]   ;;  %s1115_s24 = smov [#allocation10]  }
  0x36   :  { %s44_s23 = sshll.u32 %s1114_s21, 4  ;;  %s72_s25 = sshll.u32 %s1115_s24, 4  ;;  %s45_s23 = int_to_ptr.vmem [resolvable:$true] %s44_s23  ;;  %s73_s25 = int_to_ptr.vmem [resolvable:$true] %s72_s25 }
  0x37   :  { %s1033_s29 = scalar_lea.hbm %s1287_s2, 1024 }
  0x38   :  { %p1034_p10 = scmp.ne.s32.totalorder %s1287_s2, %s1033_s29  ;;  %p1037_p11 = scmp.lt.u32.totalorder %s1033_s29, %s1287_s2 }
  0x3a   :  { %p1039_p12 = pnand %p1037_p11, %p1034_p10 }
  0x3c   :  { %1042 = shalt.err (!%p1039_p12)
}
  0x3d   :  { %s1043_s0 = scalar_lea.vmem %s45_s23, 1024  ;;  %p1048_p0 = scmp.lt.s32.totalorder %s45_s23, %s45_s23 }
  0x3e   :  { %p1044_p13 = scmp.ne.s32.totalorder %s45_s23, %s1043_s0  ;;  %p1049_p1 = scmp.lt.s32.totalorder %s1043_s0, %s1043_s0 }
  0x40   :  { %p1050_p2 = por %p1049_p1, %p1048_p0 }
  0x42   :  { %p1051_p3 = pnand %p1050_p2, %p1044_p13 }
  0x44   :  { %1054 = shalt.err (!%p1051_p3)
}
  0x45   :  { %50 = dma.hbm_to_vmem [thread:$0]  %s1287_s2, 1024, %s45_s23, [#allocation6], %s1112_s28, %s1112_s28, %s1113_s9  }
  0x46   :  { %s1055_s15 = scalar_lea.hbm %s1291_s6, 1024 }
  0x47   :  { %p1056_p4 = scmp.ne.s32.totalorder %s1291_s6, %s1055_s15  ;;  %p1059_p5 = scmp.lt.u32.totalorder %s1055_s15, %s1291_s6 }
  0x49   :  { %p1061_p6 = pnand %p1059_p5, %p1056_p4 }
  0x4b   :  { %1064 = shalt.err (!%p1061_p6)
}
  0x4c   :  { %s1065_s4 = scalar_lea.vmem %s73_s25, 1024  ;;  %p1070_p8 = scmp.lt.s32.totalorder %s73_s25, %s73_s25 }
  0x4d   :  { %p1066_p7 = scmp.ne.s32.totalorder %s73_s25, %s1065_s4  ;;  %p1071_p9 = scmp.lt.s32.totalorder %s1065_s4, %s1065_s4 }
  0x4f   :  { %p1072_p10 = por %p1071_p9, %p1070_p8 }
  0x51   :  { %p1073_p11 = pnand %p1072_p10, %p1066_p7 }
  0x53   :  { %1076 = shalt.err (!%p1073_p11)
}
  0x54   :  { %78 = dma.hbm_to_vmem [thread:$0]  %s1291_s6, 1024, %s73_s25, [#allocation9], %s1112_s28, %s1112_s28, %s1113_s9  }
  0x55   :  { %1099 = dma.done.wait [#allocation3], 64  }
  0x56   :  { %1100 = vsyncadd [#allocation3], 4294967232 }
  0x57   :  { %1101 = dma.done.wait [#allocation6], 5120  }
  0x58   :  { %1102 = vsyncadd [#allocation6], 4294962176 }
  0x59   :  { %1103 = dma.done.wait [#allocation9], 2048  }
  0x5a   :  { %1104 = vsyncadd [#allocation9], 4294965248  ;;  %v1116_v0 = vmov 0   ;;  %v895_v1 = vld [vmem:[#allocation5 + $0x4] ss:$16 sps:$4 sm:$0xff]   ;;  %v1117_v35 = vmov 0.0  }
  0x5b   :  { %322 = vmatprep.mubr.bf16.mxu0 %v1116_v0  ;;  %363 = vmatprep.mubr.bf16.mxu1 %v1116_v0  ;;  %v897_v2 = vld [vmem:[#allocation5 + $0xc] ss:$16 sps:$4 sm:$0xff]   ;;  %v899_v3 = vld [vmem:[#allocation5] ss:$16 sps:$4 sm:$0xff]   ;;  %v900_v4 = vld [vmem:[#allocation5 + $0x8] ss:$16 sps:$4 sm:$0xff]  }
  0x5c   :  { %290 = vmatprep.subr.bf16.mxu0 %v895_v1  ;;  %331 = vmatprep.subr.bf16.mxu1 %v897_v2  ;;  %v901_v5 = vld [vmem:[#allocation5 + $0x24] ss:$16 sps:$4 sm:$0xff]   ;;  %v903_v6 = vld [vmem:[#allocation5 + $0x2c] ss:$16 sps:$4 sm:$0xff]   ;;  %v905_v7 = vld [vmem:[#allocation5 + $0x20] ss:$16 sps:$4 sm:$0xff]  }
  0x5d   :  { %291 = vmatpush1.bf16.msra.mxu0 %v899_v3  ;;  %332 = vmatpush1.bf16.msra.mxu1 %v900_v4  ;;  %v906_v8 = vld [vmem:[#allocation5 + $0x28] ss:$16 sps:$4 sm:$0xff]   ;;  %v907_v9 = vld [vmem:[#allocation5 + $0x44] ss:$16 sps:$4 sm:$0xff]   ;;  %v909_v10 = vld [vmem:[#allocation5 + $0x4c] ss:$16 sps:$4 sm:$0xff]  }
  0x5e   :  { %292 = vmatprep.subr.bf16.mxu0 %v901_v5  ;;  %333 = vmatprep.subr.bf16.mxu1 %v903_v6  ;;  %v911_v11 = vld [vmem:[#allocation5 + $0x40] ss:$16 sps:$4 sm:$0xff]   ;;  %v912_v12 = vld [vmem:[#allocation5 + $0x48] ss:$16 sps:$4 sm:$0xff]   ;;  %v913_v13 = vld [vmem:[#allocation5 + $0x64] ss:$16 sps:$4 sm:$0xff]  }
  0x5f   :  { %v915_v14 = vld [vmem:[#allocation5 + $0x6c] ss:$16 sps:$4 sm:$0xff]   ;;  %v917_v15 = vld [vmem:[#allocation5 + $0x60] ss:$16 sps:$4 sm:$0xff]   ;;  %v918_v16 = vld [vmem:[#allocation5 + $0x68] ss:$16 sps:$4 sm:$0xff]  }
  0x60   :  { %v919_v17 = vld [vmem:[#allocation5 + $0x84] ss:$16 sps:$4 sm:$0xff]   ;;  %v921_v18 = vld [vmem:[#allocation5 + $0x8c] ss:$16 sps:$4 sm:$0xff]   ;;  %v923_v19 = vld [vmem:[#allocation5 + $0x80] ss:$16 sps:$4 sm:$0xff]  }
  0x61   :  { %293 = vmatpush1.bf16.msra.mxu0 %v905_v7  ;;  %334 = vmatpush1.bf16.msra.mxu1 %v906_v8  ;;  %v924_v20 = vld [vmem:[#allocation5 + $0x88] ss:$16 sps:$4 sm:$0xff]   ;;  %v925_v21 = vld [vmem:[#allocation5 + $0xa4] ss:$16 sps:$4 sm:$0xff]   ;;  %v927_v22 = vld [vmem:[#allocation5 + $0xac] ss:$16 sps:$4 sm:$0xff]  }
  0x62   :  { %294 = vmatprep.subr.bf16.mxu0 %v907_v9  ;;  %335 = vmatprep.subr.bf16.mxu1 %v909_v10  ;;  %v929_v23 = vld [vmem:[#allocation5 + $0xa0] ss:$16 sps:$4 sm:$0xff]   ;;  %v930_v24 = vld [vmem:[#allocation5 + $0xa8] ss:$16 sps:$4 sm:$0xff]   ;;  %v931_v25 = vld [vmem:[#allocation5 + $0xc4] ss:$16 sps:$4 sm:$0xff]  }
  0x63   :  { %v933_v26 = vld [vmem:[#allocation5 + $0xcc] ss:$16 sps:$4 sm:$0xff]   ;;  %v935_v27 = vld [vmem:[#allocation5 + $0xc0] ss:$16 sps:$4 sm:$0xff]   ;;  %v936_v28 = vld [vmem:[#allocation5 + $0xc8] ss:$16 sps:$4 sm:$0xff]  }
  0x64   :  { %v937_v29 = vld [vmem:[#allocation5 + $0xe4] ss:$16 sps:$4 sm:$0xff]   ;;  %v939_v30 = vld [vmem:[#allocation5 + $0xec] ss:$16 sps:$4 sm:$0xff]   ;;  %v941_v31 = vld [vmem:[#allocation5 + $0xe0] ss:$16 sps:$4 sm:$0xff]  }
  0x65   :  { %295 = vmatpush1.bf16.msra.mxu0 %v911_v11  ;;  %336 = vmatpush1.bf16.msra.mxu1 %v912_v12  ;;  %v942_v32 = vld [vmem:[#allocation5 + $0xe8] ss:$16 sps:$4 sm:$0xff]   ;;  %v97_v33 = vld [vmem:[#allocation2] sm:$0xf]  ;;  %v943_v34 = vld [vmem:[#allocation7] sm:$0xff]   ;;  %vm1118_vm0 = vmmov 0  }
  0x66   :  { %296 = vmatprep.subr.bf16.mxu0 %v913_v13  ;;  %337 = vmatprep.subr.bf16.mxu1 %v915_v14  ;;  %v944_v36 = vld [vmem:[#allocation7 + $0x8] sm:$0xff]   ;;  %v945_v37 = vld [vmem:[#allocation7 + $0x10] sm:$0xff]   ;;  %v946_v38 = vld [vmem:[#allocation7 + $0x18] sm:$0xff]   ;;  %s1119_s24 = smov [#allocation11]  }
  0x67   :  { %v947_v39 = vld [vmem:[#allocation7 + $0x20] sm:$0xff]   ;;  %v948_v40 = vld [vmem:[#allocation7 + $0x28] sm:$0xff]   ;;  %v949_v41 = vld [vmem:[#allocation7 + $0x30] sm:$0xff]   ;;  %s725_s25 = sshll.u32 %s1119_s24, 4  ;;  %s726_s25 = int_to_ptr.vmem [resolvable:$true] %s725_s25 }
  0x68   :  { %v950_v42 = vld [vmem:[#allocation7 + $0x38] sm:$0xff]   ;;  %v951_v43 = vld [vmem:[#allocation8] sm:$0xff]   ;;  %v952_v44 = vld [vmem:[#allocation8 + $0x8] sm:$0xff]   ;;  %p1082_p13 = scmp.lt.s32.totalorder %s726_s25, %s726_s25 }
  0x69   :  { %297 = vmatpush1.bf16.msra.mxu0 %v917_v15  ;;  %338 = vmatpush1.bf16.msra.mxu1 %v918_v16  ;;  %v953_v45 = vld [vmem:[#allocation8 + $0x10] sm:$0xff]   ;;  %v954_v46 = vld [vmem:[#allocation8 + $0x18] sm:$0xff]   ;;  %v955_v47 = vld [vmem:[#allocation8 + $0x20] sm:$0xff]  }
  0x6a   :  { %298 = vmatprep.subr.bf16.mxu0 %v919_v17  ;;  %339 = vmatprep.subr.bf16.mxu1 %v921_v18  ;;  %v956_v48 = vld [vmem:[#allocation8 + $0x28] sm:$0xff]   ;;  %v957_v1 = vld [vmem:[#allocation8 + $0x30] sm:$0xff]   ;;  %v958_v2 = vld [vmem:[#allocation8 + $0x38] sm:$0xff]  }
  0x6b   :  { %v959_v3 = vld [vmem:[#allocation10] sm:$0xff]   ;;  %v960_v4 = vld [vmem:[#allocation10 + $0x8] sm:$0xff]   ;;  %v961_v5 = vld [vmem:[#allocation10 + $0x10] sm:$0xff]  }
  0x6c   :  { %v962_v6 = vld [vmem:[#allocation10 + $0x18] sm:$0xff]   ;;  %v963_v7 = vld [vmem:[#allocation10 + $0x20] sm:$0xff]   ;;  %v964_v8 = vld [vmem:[#allocation10 + $0x28] sm:$0xff]  }
  0x6d   :  { %299 = vmatpush1.bf16.msra.mxu0 %v923_v19  ;;  %340 = vmatpush1.bf16.msra.mxu1 %v924_v20  ;;  %v768_v9 = vld [vmem:[%s1288_s3] ss:$0 sm:$0xff]  ;;  %v965_v17 = vld [vmem:[#allocation10 + $0x30] sm:$0xff]  }
  0x6e   :  { %300 = vmatprep.subr.bf16.mxu0 %v925_v21  ;;  %341 = vmatprep.subr.bf16.mxu1 %v927_v22  ;;  %v966_v18 = vld [vmem:[#allocation10 + $0x38] sm:$0xff]  }
  0x6f   :  { %v777_v19 = vld [vmem:[%s1290_s5] ss:$0 sm:$0xff]  ;;  %s1077_s5 = scalar_lea.vmem %s726_s25, 128 }
  0x70   :  { %p1078_p12 = scmp.ne.s32.totalorder %s726_s25, %s1077_s5  ;;  %p1083_p0 = scmp.lt.s32.totalorder %s1077_s5, %s1077_s5 }
  0x71   :  { %301 = vmatpush1.bf16.msra.mxu0 %v929_v23  ;;  %342 = vmatpush1.bf16.msra.mxu1 %v930_v24 }
  0x72   :  { %302 = vmatprep.subr.bf16.mxu0 %v931_v25  ;;  %343 = vmatprep.subr.bf16.mxu1 %v933_v26  ;;  %p1084_p1 = por %p1083_p0, %p1082_p13 }
  0x74   :  { %p1085_p2 = pnand %p1084_p1, %p1078_p12 }
  0x75   :  { %303 = vmatpush1.bf16.msra.mxu0 %v935_v27  ;;  %344 = vmatpush1.bf16.msra.mxu1 %v936_v28  ;;  %v786_v27 = vld [vmem:[%s1292_s7] ss:$0 sm:$0xff] }
  0x76   :  { %304 = vmatprep.subr.bf16.mxu0 %v937_v29  ;;  %345 = vmatprep.subr.bf16.mxu1 %v939_v30 }
  0x79   :  { %305 = vmatpush1.bf16.msra.mxu0 %v941_v31  ;;  %346 = vmatpush1.bf16.msra.mxu1 %v942_v32 }
  0x7a   :  { %822 = vmatprep.subr.bf16.mxu0 %v1117_v35  ;;  %842 = vmatprep.subr.bf16.mxu1 %v1117_v35 }
  0x7c   :  { %323 = vmatmul.mubr.bf16.vlgmr.msra.gmra.mrb[0].mxu0 %v97_v33  ;;  %364 = vmatmul.mubr.bf16.vlgmr.msra.gmra.mrb[0].mxu1 %v97_v33 }
  0x7d   :  { %823 = vmatpush3.bf16.msra.mxu0 %v943_v34  ;;  %838 = vmatprep.mubr.msk.bf16.mxu0 %vm1118_vm0, %v1117_v35 }
  0x7e   :  { %824 = vmatprep.subr.bf16.mxu0 %v1117_v35  ;;  %858 = vmatprep.mubr.msk.bf16.mxu1 %vm1118_vm0, %v1117_v35 }
  0x7f   :  { %843 = vmatpush3.bf16.msra.mxu1 %v951_v43 }
  0x80   :  { %844 = vmatprep.subr.bf16.mxu1 %v1117_v35 }
  0x81   :  { %825 = vmatpush3.bf16.msra.mxu0 %v944_v36 }
  0x82   :  { %826 = vmatprep.subr.bf16.mxu0 %v1117_v35 }
  0x83   :  { %845 = vmatpush3.bf16.msra.mxu1 %v952_v44 }
  0x84   :  { %846 = vmatprep.subr.bf16.mxu1 %v1117_v35 }
  0x85   :  { %827 = vmatpush3.bf16.msra.mxu0 %v945_v37 }
  0x86   :  { %828 = vmatprep.subr.bf16.mxu0 %v1117_v35 }
  0x87   :  { %847 = vmatpush3.bf16.msra.mxu1 %v953_v45 }
  0x88   :  { %848 = vmatprep.subr.bf16.mxu1 %v1117_v35 }
  0x89   :  { %829 = vmatpush3.bf16.msra.mxu0 %v946_v38 }
  0x8a   :  { %830 = vmatprep.subr.bf16.mxu0 %v1117_v35 }
  0x8b   :  { %849 = vmatpush3.bf16.msra.mxu1 %v954_v46 }
  0x8c   :  { %850 = vmatprep.subr.bf16.mxu1 %v1117_v35 }
  0x8d   :  { %831 = vmatpush3.bf16.msra.mxu0 %v947_v39 }
  0x8e   :  { %832 = vmatprep.subr.bf16.mxu0 %v1117_v35 }
  0x8f   :  { %851 = vmatpush3.bf16.msra.mxu1 %v955_v47 }
  0x90   :  { %852 = vmatprep.subr.bf16.mxu1 %v1117_v35 }
  0x91   :  { %833 = vmatpush3.bf16.msra.mxu0 %v948_v40 }
  0x92   :  { %834 = vmatprep.subr.bf16.mxu0 %v1117_v35 }
  0x93   :  { %853 = vmatpush3.bf16.msra.mxu1 %v956_v48 }
  0x94   :  { %854 = vmatprep.subr.bf16.mxu1 %v1117_v35 }
  0x95   :  { %835 = vmatpush3.bf16.msra.mxu0 %v949_v41 }
  0x96   :  { %836 = vmatprep.subr.bf16.mxu0 %v1117_v35 }
  0x97   :  { %855 = vmatpush3.bf16.msra.mxu1 %v957_v1 }
  0x98   :  { %856 = vmatprep.subr.bf16.mxu1 %v1117_v35 }
  0x99   :  { %837 = vmatpush3.bf16.msra.mxu0 %v950_v42 }
  0x9a   :  { %862 = vmatprep.subr.bf16.mxu0 %v1117_v35 }
  0x9b   :  { %857 = vmatpush3.bf16.msra.mxu1 %v958_v2 }
 0x14f   :  { %v324_v49 = vpop.f32.mrb[0].mxu0  ;;  %v365_v50 = vpop.f32.mrb[0].mxu1 }
 0x150   :  { %v372_v51 = vmax.f32 %v324_v49, 0.0  ;;  %v374_v52 = vmax.f32 %v365_v50, 0.0  ;;  %v326_v53 = vpop.f32.mrb[1].mxu0  ;;  %v367_v54 = vpop.f32.mrb[1].mxu1 }
 0x151   :  { %v373_v55 = vmax.f32 %v326_v53, 0.0  ;;  %v375_v56 = vmax.f32 %v367_v54, 0.0  ;;  %v328_v57 = vpop.f32.mrb[2].mxu0  ;;  %v369_v58 = vpop.f32.mrb[2].mxu1 }
 0x152   :  { %v329_v59 = vpop.f32.mrb[3].mxu0  ;;  %v370_v60 = vpop.f32.mrb[3].mxu1 }
 0x153   :  { %v376_v61 = vmax.f32 %v372_v51, %v373_v55  ;;  %v377_v62 = vmax.f32 %v374_v52, %v375_v56 }
 0x155   :  { %v378_v63 = vmax.f32 %v376_v61, %v377_v62 }
 0x157   :  { %v379_v0 = vpack.c.bf16 %v378_v63, %v378_v63 }
 0x159   :  { %839 = vmatmul.mubr.bf16.vlgmr.msra.gmra.mrb[4].mxu0 %v379_v0 }
 0x15a   :  { %878 = vmatprep.mubr.msk.bf16.mxu0 %vm1118_vm0, %v1117_v35  ;;  %863 = vmatpush3.bf16.msra.mxu0 %v959_v3 }
 0x15b   :  { %864 = vmatprep.subr.bf16.mxu0 %v1117_v35 }
 0x15e   :  { %865 = vmatpush3.bf16.msra.mxu0 %v960_v4 }
 0x15f   :  { %866 = vmatprep.subr.bf16.mxu0 %v1117_v35 }
 0x162   :  { %867 = vmatpush3.bf16.msra.mxu0 %v961_v5 }
 0x163   :  { %868 = vmatprep.subr.bf16.mxu0 %v1117_v35 }
 0x166   :  { %869 = vmatpush3.bf16.msra.mxu0 %v962_v6 }
 0x167   :  { %870 = vmatprep.subr.bf16.mxu0 %v1117_v35 }
 0x16a   :  { %871 = vmatpush3.bf16.msra.mxu0 %v963_v7 }
 0x16b   :  { %872 = vmatprep.subr.bf16.mxu0 %v1117_v35 }
 0x16e   :  { %873 = vmatpush3.bf16.msra.mxu0 %v964_v8 }
 0x16f   :  { %874 = vmatprep.subr.bf16.mxu0 %v1117_v35 }
 0x172   :  { %875 = vmatpush3.bf16.msra.mxu0 %v965_v17 }
 0x173   :  { %876 = vmatprep.subr.bf16.mxu0 %v1117_v35 }
 0x176   :  { %877 = vmatpush3.bf16.msra.mxu0 %v966_v18 }
 0x22c   :  { %v485_v10 = vpop.f32.mrb[4].mxu0 }
 0x22d   :  { %v486_v11 = vadd.f32 %v768_v9, %v485_v10  ;;  %v840_v12 = vpop.f32.mrb[5].mxu0 }
 0x22e   :  { %v488_v13 = vpop.f32.mrb[6].mxu0 }
 0x22f   :  { %v491_v14 = vmax.f32 %v486_v11, 0.0  ;;  %v841_v15 = vpop.f32.mrb[7].mxu0 }
 0x231   :  { %v492_v16 = vpack.c.bf16 %v491_v14, %v491_v14 }
 0x233   :  { %859 = vmatmul.mubr.bf16.vlgmr.msra.gmra.mrb[4].mxu1 %v492_v16 }
 0x306   :  { %v598_v20 = vpop.f32.mrb[4].mxu1 }
 0x307   :  { %v599_v21 = vadd.f32 %v777_v19, %v598_v20  ;;  %v860_v22 = vpop.f32.mrb[5].mxu1 }
 0x308   :  { %v601_v23 = vpop.f32.mrb[6].mxu1 }
 0x309   :  { %v604_v24 = vmax.f32 %v599_v21, 0.0  ;;  %v861_v25 = vpop.f32.mrb[7].mxu1 }
 0x30b   :  { %v605_v26 = vpack.c.bf16 %v604_v24, %v604_v24 }
 0x30d   :  { %879 = vmatmul.mubr.bf16.vlgmr.msra.gmra.mrb[8].mxu0 %v605_v26 }
 0x3e0   :  { %v711_v28 = vpop.f32.mrb[8].mxu0 }
 0x3e1   :  { %v712_v29 = vadd.f32 %v786_v27, %v711_v28  ;;  %v880_v30 = vpop.f32.mrb[9].mxu0 }
 0x3e2   :  { %v714_v31 = vpop.f32.mrb[10].mxu0 }
 0x3e3   :  { %v717_v32 = vmax.f32 %v712_v29, 0.0  ;;  %v881_v33 = vpop.f32.mrb[11].mxu0 }
 0x3e5   :  { %718 = vst [vmem:[#allocation11] sm:$0xff] %v717_v32 }
 0x3e6   :  { %1088 = shalt.err (!%p1085_p2)
}
 0x3e7   :  { %s1089_s7 = scalar_lea.hbm %s1293_s8, 128 }
 0x3e8   :  { %p1090_p3 = scmp.ne.s32.totalorder %s1293_s8, %s1089_s7  ;;  %p1093_p4 = scmp.lt.u32.totalorder %s1089_s7, %s1293_s8 }
 0x3ea   :  { %p1095_p5 = pnand %p1093_p4, %p1090_p3 }
 0x3ec   :  { %1098 = shalt.err (!%p1095_p5)
}
 0x3ed   :  { %728 = dma.vmem_to_hbm [thread:$0]  %s726_s25, 128, %s1293_s8, [#allocation4]  }
 0x3ee   :  { %1105 = dma.done.wait [#allocation4], 128  }
 0x3ef   :  { %1106 = vsyncadd [#allocation4], 4294967168 }
 0x3f0   :  { %732 = vsyncpa [#allocation3], 1 }
 0x3f1   :  { %733 = vsyncpa [#allocation6], 1 }
 0x3f2   :  { %734 = vsyncpa [#allocation9], 1 }
 0x3f3   :  { %735 = vsyncpa [#allocation4], 1 }

</bundles_post_ra>
